<compile_context>
chip_gen: v5e
topology: v5e:2x2
jax: 0.10.0
libtpu: 0.0.40
codegen_flags: <defaults>
</compile_context>

<pallas_src>
import jax
import jax.numpy as jnp
from jax.experimental import pallas as pl
from jax.experimental.pallas import tpu as pltpu


LANES = 128  # lane width of the packed parameter buffer


def make_vae_kernel(meta, para_dim, z_dim):
    """meta: static tuple of (row_offset, fan_in_padded) for the 6 fused layers."""

    def layer(wp_ref, a, idx, relu):
        row, fi_pad = meta[idx]
        aw = a.shape[1]
        if aw > fi_pad:            # wide (128-lane) activation from previous layer
            a = a[:, :fi_pad]
        elif aw < fi_pad:          # e.g. z (z_dim cols) -> pad K to sublane multiple
            a = jnp.concatenate(
                [a, jnp.zeros((a.shape[0], fi_pad - aw), a.dtype)], axis=1)
        # Weight slice: rows [row, row+fi_pad) are sublane-aligned (both multiples
        # of 8), all 128 lanes (zero beyond the true fan_out) -> unmasked vld.
        w = wp_ref[row:row + fi_pad, :]                       # (fi_pad, 128)
        b = wp_ref[row + fi_pad:row + fi_pad + 1, :]          # (1, 128) bias row
        y = jnp.dot(a, w, preferred_element_type=jnp.float32) + b   # (bm, 128)
        return jnp.maximum(y, 0.0) if relu else y

    def kernel(x_ref, eps_ref, wp_ref, out_ref, mean_ref, lv_ref):
        x = x_ref[...]                                  # (bm, para_dim)

        # ---- encoder ----
        h = layer(wp_ref, x, 0, True)
        h = layer(wp_ref, h, 1, True)
        heads = layer(wp_ref, h, 2, False)              # fused [mean | log_var] head
        mean = heads[:, :z_dim]
        log_var = heads[:, z_dim:2 * z_dim]

        # ---- reparameterize: z = mean + exp(0.5*log_var) * eps (f32, EUP) ----
        z = mean + jnp.exp(0.5 * log_var) * eps_ref[...]

        # ---- decoder ----
        o = layer(wp_ref, z, 3, True)
        o = layer(wp_ref, o, 4, True)
        out = layer(wp_ref, o, 5, False)

        # ---- three direct stores (no fused slab, no wrapper slicing) ----
        out_ref[...] = out[:, :para_dim]
        mean_ref[...] = mean
        lv_ref[...] = log_var

    return kernel


def prepare_params(params):
    """Pack all layer weights+biases into one lane-dense f32 buffer.

    Per layer block (rows): [ W (fi rows) ; zero pad to fi_pad (mult of 8) ;
    bias row ; zero pad to fi_pad+8 ].  Lanes padded to 128 with zeros.
    Returns (packed, meta) with meta = ((row_offset, fi_pad), ...).
    """
    layers = [
        (params["w_e10"], params["b_e10"]),
        (params["w_e11"], params["b_e11"]),
        # fuse mean / log_var heads along the output dimension
        (jnp.concatenate([params["w_e2"], params["w_e3"]], axis=1),
         jnp.concatenate([params["b_e2"], params["b_e3"]], axis=1)),
        (params["w_d40"], params["b_d40"]),
        (params["w_d41"], params["b_d41"]),
        (params["w_d5"], params["b_d5"]),
    ]
    wmax = max(LANES, max(int(w.shape[1]) for w, _ in layers))
    wmax = -(-wmax // LANES) * LANES                      # round lanes up to 128

    blocks, meta, row = [], [], 0
    for w, b in layers:
        fi, fo = int(w.shape[0]), int(w.shape[1])
        fi_pad = -(-fi // 8) * 8                          # sublane-align fan_in
        blk = jnp.zeros((fi_pad + 8, wmax), jnp.float32)
        blk = blk.at[:fi, :fo].set(w.astype(jnp.float32))
        blk = blk.at[fi_pad, :fo].set(b.reshape(fo).astype(jnp.float32))
        blocks.append(blk)
        meta.append((row, fi_pad))
        row += fi_pad + 8
    packed = jnp.concatenate(blocks, axis=0)              # e.g. (160, 128) f32
    return packed, tuple(meta)


def pick_bm(B):
    """Largest multiple-of-8 divisor of B, capped, with grid length >= 2 when
    B >= 16 (so v7x's two TensorCores both participate).  Falls back to bm=B
    (single step) so bm always divides B exactly."""
    if B < 16 or B % 8 != 0:
        return B
    cap = min(B // 2, 2048)                               # 2048*(8+4)*4B tiles << VMEM
    best = None
    for cand in range(8, cap + 1, 8):
        if B % cand == 0:
            best = cand
    return best if best is not None else B


def vae_forward(x, eps, packed, meta, para_dim, z_dim):
    B = x.shape[0]
    bm = pick_bm(B)
    grid = (B // bm,)

    kernel = make_vae_kernel(meta, para_dim, z_dim)

    rows, lanes = int(packed.shape[0]), int(packed.shape[1])
    flops = 2 * B * rows * lanes                          # generous (incl. padding)
    bytes_acc = 4 * (B * (para_dim + z_dim)               # x, eps reads
                     + rows * lanes                       # params
                     + B * (para_dim + 2 * z_dim))        # out, mean, log_var writes

    out, mean, log_var = pl.pallas_call(
        kernel,
        out_shape=(
            jax.ShapeDtypeStruct((B, para_dim), jnp.float32),
            jax.ShapeDtypeStruct((B, z_dim), jnp.float32),
            jax.ShapeDtypeStruct((B, z_dim), jnp.float32),
        ),
        grid=grid,
        in_specs=[
            pl.BlockSpec((bm, para_dim), lambda i: (i, 0)),      # x
            pl.BlockSpec((bm, z_dim), lambda i: (i, 0)),         # eps
            pl.BlockSpec(packed.shape, lambda i: (0, 0)),        # params, VMEM-resident
        ],
        out_specs=(
            pl.BlockSpec((bm, para_dim), lambda i: (i, 0)),      # out
            pl.BlockSpec((bm, z_dim), lambda i: (i, 0)),         # mean
            pl.BlockSpec((bm, z_dim), lambda i: (i, 0)),         # log_var
        ),
        compiler_params=pltpu.CompilerParams(
            dimension_semantics=("parallel",),
            vmem_limit_bytes=32 * 1024 * 1024,                   # safe on v5e/v6e/v7x
        ),
        cost_estimate=pl.CostEstimate(
            flops=flops,
            transcendentals=B * z_dim,
            bytes_accessed=bytes_acc,
        ),
    )(x, eps, packed)
    return out, mean, log_var


def init_params(key, para_dim, z_dim, h_dim):
    """Deterministic synthetic initialization (not a checkpoint load)."""
    def lin(key, fan_in, fan_out):
        kw, kb = jax.random.split(key)
        scale = 1.0 / jnp.sqrt(fan_in)
        w = jax.random.uniform(kw, (fan_in, fan_out), jnp.float32, -scale, scale)
        b = jax.random.uniform(kb, (1, fan_out), jnp.float32, -scale, scale)
        return w, b

    keys = jax.random.split(key, 7)
    p = {}
    # encoder e1: para -> h0 -> h1
    p["w_e10"], p["b_e10"] = lin(keys[0], para_dim, h_dim[0])
    p["w_e11"], p["b_e11"] = lin(keys[1], h_dim[0], h_dim[1])
    # heads
    p["w_e2"], p["b_e2"] = lin(keys[2], h_dim[-1], z_dim)
    p["w_e3"], p["b_e3"] = lin(keys[3], h_dim[-1], z_dim)
    # decoder d4: z -> h1 -> h0
    p["w_d40"], p["b_d40"] = lin(keys[4], z_dim, h_dim[-1])
    p["w_d41"], p["b_d41"] = lin(keys[5], h_dim[-1], h_dim[0])
    # d5: h0 -> para
    p["w_d5"], p["b_d5"] = lin(keys[6], h_dim[0], para_dim)
    return p


def reference_forward(x, params, eps):
    """Plain-JAX reference mirroring the PyTorch module semantics."""
    h = jnp.maximum(x @ params["w_e10"] + params["b_e10"], 0.0)
    h = jnp.maximum(h @ params["w_e11"] + params["b_e11"], 0.0)
    mean = h @ params["w_e2"] + params["b_e2"]
    log_var = h @ params["w_e3"] + params["b_e3"]
    z = mean + jnp.exp(0.5 * log_var) * eps
    o = jnp.maximum(z @ params["w_d40"] + params["b_d40"], 0.0)
    o = jnp.maximum(o @ params["w_d41"] + params["b_d41"], 0.0)
    out = o @ params["w_d5"] + params["b_d5"]
    return out, mean, log_var


if __name__ == "__main__":
    para_dim, z_dim, h_dim = 8, 4, (32, 16)
    batch = 2

    key = jax.random.PRNGKey(0)
    k_params, k_x, k_eps = jax.random.split(key, 3)

    params = init_params(k_params, para_dim, z_dim, h_dim)
    x = jax.random.normal(k_x, (batch, para_dim), dtype=jnp.float32)
    # eps corresponds to torch.randn(log_var.shape) in the PyTorch module; it
    # is drawn outside the kernel so the kernel is deterministic in its inputs.
    eps = jax.random.normal(k_eps, (batch, z_dim), dtype=jnp.float32)

    packed, meta = prepare_params(params)   # host-side one-time packing
    jax.block_until_ready(packed)

    out, mean, log_var = vae_forward(x, eps, packed, meta, para_dim, z_dim)
    jax.block_until_ready((out, mean, log_var))

    ref_out, ref_mean, ref_lv = reference_forward(x, params, eps)
    # Tolerance accounts for MXU default-precision f32 matmuls vs XLA reference.
    assert jnp.allclose(out, ref_out, atol=2e-3, rtol=2e-3), "out mismatch"
    assert jnp.allclose(mean, ref_mean, atol=2e-3, rtol=2e-3), "mean mismatch"
    assert jnp.allclose(log_var, ref_lv, atol=2e-3, rtol=2e-3), "log_var mismatch"

    print("KERNEL_OK")
</pallas_src>

<mosaic_0001>
module attributes {stable_mosaic.version = 11 : i64} {
  func.func @kernel(%arg0: i32, %arg1: memref<2x8xf32, #tpu.memory_space<vmem>>, %arg2: memref<2x4xf32, #tpu.memory_space<vmem>>, %arg3: memref<160x128xf32, #tpu.memory_space<vmem>>, %arg4: memref<2x8xf32, #tpu.memory_space<vmem>>, %arg5: memref<2x4xf32, #tpu.memory_space<vmem>>, %arg6: memref<2x4xf32, #tpu.memory_space<vmem>>) attributes {dimension_semantics = [#tpu.dimension_semantics<parallel>], iteration_bounds = array<i64: 1>, scalar_prefetch = 0 : i64, scratch_operands = 0 : i64, tpu.core_type = #tpu.core_type<tc>, window_params = [{transform_indices = @transform_0, window_bounds = array<i64: 2, 8>}, {transform_indices = @transform_1, window_bounds = array<i64: 2, 4>}, {pipeline_mode = #tpu.pipeline_mode<synchronous>, transform_indices = @transform_2, window_bounds = array<i64: 160, 128>}, {transform_indices = @transform_3, window_bounds = array<i64: 2, 8>}, {transform_indices = @transform_4, window_bounds = array<i64: 2, 4>}, {transform_indices = @transform_5, window_bounds = array<i64: 2, 4>}]} {
    %c0 = arith.constant 0 : index
    %c0_0 = arith.constant 0 : index
    %0 = vector.load %arg1[%c0, %c0_0] : memref<2x8xf32, #tpu.memory_space<vmem>>, vector<2x8xf32>
    %c0_1 = arith.constant 0 : index
    %c0_2 = arith.constant 0 : index
    %1 = vector.load %arg3[%c0_1, %c0_2] : memref<160x128xf32, #tpu.memory_space<vmem>>, vector<8x128xf32>
    %c8 = arith.constant 8 : index
    %c0_3 = arith.constant 0 : index
    %2 = vector.load %arg3[%c8, %c0_3] : memref<160x128xf32, #tpu.memory_space<vmem>>, vector<1x128xf32>
    %cst = arith.constant dense<0.000000e+00> : vector<2x128xf32>
    %3 = tpu.matmul %0, %1, %cst {dimension_numbers = #tpu.dot_dimension_numbers<[1], [0], [0], [1], [0, 0, 1, 1], [], []>} : vector<2x8xf32>, vector<8x128xf32>, vector<2x128xf32> -> vector<2x128xf32>
    %4 = vector.broadcast %2 : vector<1x128xf32> to vector<2x128xf32>
    %5 = arith.addf %3, %4 : vector<2x128xf32>
    %cst_4 = arith.constant 0.000000e+00 : f32
    %6 = vector.broadcast %cst_4 : f32 to vector<2x128xf32>
    %7 = arith.maximumf %5, %6 : vector<2x128xf32>
    %8 = vector.extract_strided_slice %7 {offsets = [0, 0], sizes = [2, 32], strides = [1, 1]} : vector<2x128xf32> to vector<2x32xf32>
    %c16 = arith.constant 16 : index
    %c0_5 = arith.constant 0 : index
    %9 = vector.load %arg3[%c16, %c0_5] : memref<160x128xf32, #tpu.memory_space<vmem>>, vector<32x128xf32>
    %c48 = arith.constant 48 : index
    %c0_6 = arith.constant 0 : index
    %10 = vector.load %arg3[%c48, %c0_6] : memref<160x128xf32, #tpu.memory_space<vmem>>, vector<1x128xf32>
    %cst_7 = arith.constant dense<0.000000e+00> : vector<2x128xf32>
    %11 = tpu.matmul %8, %9, %cst_7 {dimension_numbers = #tpu.dot_dimension_numbers<[1], [0], [0], [1], [0, 0, 1, 1], [], []>} : vector<2x32xf32>, vector<32x128xf32>, vector<2x128xf32> -> vector<2x128xf32>
    %12 = vector.broadcast %10 : vector<1x128xf32> to vector<2x128xf32>
    %13 = arith.addf %11, %12 : vector<2x128xf32>
    %cst_8 = arith.constant 0.000000e+00 : f32
    %14 = vector.broadcast %cst_8 : f32 to vector<2x128xf32>
    %15 = arith.maximumf %13, %14 : vector<2x128xf32>
    %16 = vector.extract_strided_slice %15 {offsets = [0, 0], sizes = [2, 16], strides = [1, 1]} : vector<2x128xf32> to vector<2x16xf32>
    %c56 = arith.constant 56 : index
    %c0_9 = arith.constant 0 : index
    %17 = vector.load %arg3[%c56, %c0_9] : memref<160x128xf32, #tpu.memory_space<vmem>>, vector<16x128xf32>
    %c72 = arith.constant 72 : index
    %c0_10 = arith.constant 0 : index
    %18 = vector.load %arg3[%c72, %c0_10] : memref<160x128xf32, #tpu.memory_space<vmem>>, vector<1x128xf32>
    %cst_11 = arith.constant dense<0.000000e+00> : vector<2x128xf32>
    %19 = tpu.matmul %16, %17, %cst_11 {dimension_numbers = #tpu.dot_dimension_numbers<[1], [0], [0], [1], [0, 0, 1, 1], [], []>} : vector<2x16xf32>, vector<16x128xf32>, vector<2x128xf32> -> vector<2x128xf32>
    %20 = vector.broadcast %18 : vector<1x128xf32> to vector<2x128xf32>
    %21 = arith.addf %19, %20 : vector<2x128xf32>
    %22 = vector.extract_strided_slice %21 {offsets = [0, 0], sizes = [2, 4], strides = [1, 1]} : vector<2x128xf32> to vector<2x4xf32>
    %23 = vector.extract_strided_slice %21 {offsets = [0, 4], sizes = [2, 4], strides = [1, 1]} : vector<2x128xf32> to vector<2x4xf32>
    %cst_12 = arith.constant 5.000000e-01 : f32
    %24 = vector.broadcast %cst_12 : f32 to vector<2x4xf32>
    %25 = arith.mulf %24, %23 : vector<2x4xf32>
    %26 = math.exp %25 : vector<2x4xf32>
    %c0_13 = arith.constant 0 : index
    %c0_14 = arith.constant 0 : index
    %27 = vector.load %arg2[%c0_13, %c0_14] : memref<2x4xf32, #tpu.memory_space<vmem>>, vector<2x4xf32>
    %28 = arith.mulf %26, %27 : vector<2x4xf32>
    %29 = arith.addf %22, %28 : vector<2x4xf32>
    %cst_15 = arith.constant 0.000000e+00 : f32
    %30 = vector.broadcast %cst_15 : f32 to vector<2x4xf32>
    %31 = tpu.concatenate %29, %30 in 1 : vector<2x4xf32>, vector<2x4xf32> -> vector<2x8xf32>
    %c80 = arith.constant 80 : index
    %c0_16 = arith.constant 0 : index
    %32 = vector.load %arg3[%c80, %c0_16] : memref<160x128xf32, #tpu.memory_space<vmem>>, vector<8x128xf32>
    %c88 = arith.constant 88 : index
    %c0_17 = arith.constant 0 : index
    %33 = vector.load %arg3[%c88, %c0_17] : memref<160x128xf32, #tpu.memory_space<vmem>>, vector<1x128xf32>
    %cst_18 = arith.constant dense<0.000000e+00> : vector<2x128xf32>
    %34 = tpu.matmul %31, %32, %cst_18 {dimension_numbers = #tpu.dot_dimension_numbers<[1], [0], [0], [1], [0, 0, 1, 1], [], []>} : vector<2x8xf32>, vector<8x128xf32>, vector<2x128xf32> -> vector<2x128xf32>
    %35 = vector.broadcast %33 : vector<1x128xf32> to vector<2x128xf32>
    %36 = arith.addf %34, %35 : vector<2x128xf32>
    %cst_19 = arith.constant 0.000000e+00 : f32
    %37 = vector.broadcast %cst_19 : f32 to vector<2x128xf32>
    %38 = arith.maximumf %36, %37 : vector<2x128xf32>
    %39 = vector.extract_strided_slice %38 {offsets = [0, 0], sizes = [2, 16], strides = [1, 1]} : vector<2x128xf32> to vector<2x16xf32>
    %c96 = arith.constant 96 : index
    %c0_20 = arith.constant 0 : index
    %40 = vector.load %arg3[%c96, %c0_20] : memref<160x128xf32, #tpu.memory_space<vmem>>, vector<16x128xf32>
    %c112 = arith.constant 112 : index
    %c0_21 = arith.constant 0 : index
    %41 = vector.load %arg3[%c112, %c0_21] : memref<160x128xf32, #tpu.memory_space<vmem>>, vector<1x128xf32>
    %cst_22 = arith.constant dense<0.000000e+00> : vector<2x128xf32>
    %42 = tpu.matmul %39, %40, %cst_22 {dimension_numbers = #tpu.dot_dimension_numbers<[1], [0], [0], [1], [0, 0, 1, 1], [], []>} : vector<2x16xf32>, vector<16x128xf32>, vector<2x128xf32> -> vector<2x128xf32>
    %43 = vector.broadcast %41 : vector<1x128xf32> to vector<2x128xf32>
    %44 = arith.addf %42, %43 : vector<2x128xf32>
    %cst_23 = arith.constant 0.000000e+00 : f32
    %45 = vector.broadcast %cst_23 : f32 to vector<2x128xf32>
    %46 = arith.maximumf %44, %45 : vector<2x128xf32>
    %47 = vector.extract_strided_slice %46 {offsets = [0, 0], sizes = [2, 32], strides = [1, 1]} : vector<2x128xf32> to vector<2x32xf32>
    %c120 = arith.constant 120 : index
    %c0_24 = arith.constant 0 : index
    %48 = vector.load %arg3[%c120, %c0_24] : memref<160x128xf32, #tpu.memory_space<vmem>>, vector<32x128xf32>
    %c152 = arith.constant 152 : index
    %c0_25 = arith.constant 0 : index
    %49 = vector.load %arg3[%c152, %c0_25] : memref<160x128xf32, #tpu.memory_space<vmem>>, vector<1x128xf32>
    %cst_26 = arith.constant dense<0.000000e+00> : vector<2x128xf32>
    %50 = tpu.matmul %47, %48, %cst_26 {dimension_numbers = #tpu.dot_dimension_numbers<[1], [0], [0], [1], [0, 0, 1, 1], [], []>} : vector<2x32xf32>, vector<32x128xf32>, vector<2x128xf32> -> vector<2x128xf32>
    %51 = vector.broadcast %49 : vector<1x128xf32> to vector<2x128xf32>
    %52 = arith.addf %50, %51 : vector<2x128xf32>
    %53 = vector.extract_strided_slice %52 {offsets = [0, 0], sizes = [2, 8], strides = [1, 1]} : vector<2x128xf32> to vector<2x8xf32>
    %c0_27 = arith.constant 0 : index
    %c0_28 = arith.constant 0 : index
    %54 = vector.load %arg4[%c0_27, %c0_28] : memref<2x8xf32, #tpu.memory_space<vmem>>, vector<2x8xf32>
    tpu.vector_store %arg4[%c0_27, %c0_28], %53 {strides = array<i32>} : memref<2x8xf32, #tpu.memory_space<vmem>>, vector<2x8xf32>,
    %c0_29 = arith.constant 0 : index
    %c0_30 = arith.constant 0 : index
    %55 = vector.load %arg5[%c0_29, %c0_30] : memref<2x4xf32, #tpu.memory_space<vmem>>, vector<2x4xf32>
    tpu.vector_store %arg5[%c0_29, %c0_30], %22 {strides = array<i32>} : memref<2x4xf32, #tpu.memory_space<vmem>>, vector<2x4xf32>,
    %c0_31 = arith.constant 0 : index
    %c0_32 = arith.constant 0 : index
    %56 = vector.load %arg6[%c0_31, %c0_32] : memref<2x4xf32, #tpu.memory_space<vmem>>, vector<2x4xf32>
    tpu.vector_store %arg6[%c0_31, %c0_32], %23 {strides = array<i32>} : memref<2x4xf32, #tpu.memory_space<vmem>>, vector<2x4xf32>,
    return
  }
  func.func @transform_0(%arg0: i32) -> (i32, i32) {
    %c0_i32 = arith.constant 0 : i32
    %c0_i32_0 = arith.constant 0 : i32
    return %arg0, %c0_i32 : i32, i32
  }
  func.func @transform_1(%arg0: i32) -> (i32, i32) {
    %c0_i32 = arith.constant 0 : i32
    %c0_i32_0 = arith.constant 0 : i32
    return %arg0, %c0_i32 : i32, i32
  }
  func.func @transform_2(%arg0: i32) -> (i32, i32) {
    %c0_i32 = arith.constant 0 : i32
    %c0_i32_0 = arith.constant 0 : i32
    %c0_i32_1 = arith.constant 0 : i32
    return %c0_i32, %c0_i32_0 : i32, i32
  }
  func.func @transform_3(%arg0: i32) -> (i32, i32) {
    %c0_i32 = arith.constant 0 : i32
    %c0_i32_0 = arith.constant 0 : i32
    return %arg0, %c0_i32 : i32, i32
  }
  func.func @transform_4(%arg0: i32) -> (i32, i32) {
    %c0_i32 = arith.constant 0 : i32
    %c0_i32_0 = arith.constant 0 : i32
    return %arg0, %c0_i32 : i32, i32
  }
  func.func @transform_5(%arg0: i32) -> (i32, i32) {
    %c0_i32 = arith.constant 0 : i32
    %c0_i32_0 = arith.constant 0 : i32
    return %arg0, %c0_i32 : i32, i32
  }
}

</mosaic_0001>

<bundles_post_ra>
// kernel: tpu_custom_call.1
= control target key start
LH: loop header
LB: loop body
LE: loop exit
PB: predicated region body
PF: predicated region fallthrough
CT: control target
= control target key end

     0   :  { %11 = vsyncpa [#allocation3], 0  ;;  %s550_s0 = inlined_call_operand.hbm [shape: f32[2,8], index: 0, kind: input, shape index: {}]   ;;  %s551_s1 = inlined_call_operand.hbm [shape: f32[2,4], index: 1, kind: input, shape index: {}]   ;;  %s552_s2 = inlined_call_operand.hbm [shape: f32[160,128], index: 2, kind: input, shape index: {}]   ;;  %s553_s3 = inlined_call_operand.hbm [shape: f32[2,8], index: 3, kind: output, shape index: {0}]   ;;  %s554_s4 = inlined_call_operand.hbm [shape: f32[2,4], index: 4, kind: output, shape index: {1}]   ;;  %s555_s5 = inlined_call_operand.hbm [shape: f32[2,4], index: 5, kind: output, shape index: {2}]  }
   0x1   :  { %12 = vsyncpa [#allocation6], 0 }
   0x2   :  { %13 = vsyncpa [#allocation4], 0  ;;  %s31_s20 = sshll.u32 %s551_s1, 4  ;;  %s32_s20 = int_to_ptr.hbm [resolvable:$true] %s31_s20 }
   0x3   :  { %14 = vsyncpa [#allocation10], 0  ;;  %s484_s21 = smov [#allocation5]   ;;  %s20_s25 = sshll.u32 %s550_s0, 4  ;;  %s21_s25 = int_to_ptr.hbm [resolvable:$true] %s20_s25 }
   0x4   :  { %s33_s22 = sshll.u32 %s484_s21, 4  ;;  %s485_s26 = smov [#allocation2]   ;;  %s34_s22 = int_to_ptr.vmem [resolvable:$true] %s33_s22 }
   0x5   :  { %36 = dma.hbm_to_vmem [thread:$0]  %s32_s20, 32, %s34_s22, [#allocation6]  }
   0x6   :  { %s22_s27 = sshll.u32 %s485_s26, 4  ;;  %s41_s30 = sshll.u32 %s552_s2, 4  ;;  %s23_s27 = int_to_ptr.vmem [resolvable:$true] %s22_s27  ;;  %s42_s30 = int_to_ptr.hbm [resolvable:$true] %s41_s30 }
   0x7   :  { %25 = dma.hbm_to_vmem [thread:$0]  %s21_s25, 32, %s23_s27, [#allocation3]  }
   0x8   :  { %s486_s1 = smov [#allocation7]   ;;  %s487_s7 = smov 128  }
   0x9   :  { %s43_s6 = sshll.u32 %s486_s1, 4  ;;  %s488_s8 = smov 8   ;;  %s44_s6 = int_to_ptr.vmem [resolvable:$true] %s43_s6 }
   0xa   :  { %49 = dma.hbm_to_vmem [thread:$0]  %s42_s30, 2560, %s44_s6, [#allocation6], %s487_s7, %s487_s7, %s488_s8  }
   0xb   :  { %476 = dma.done.wait [#allocation3], 32  }
   0xc   :  { %477 = vsyncadd [#allocation3], 4294967264 }
   0xd   :  { %478 = dma.done.wait [#allocation6], 2592  }
   0xe   :  { %479 = vsyncadd [#allocation6], 4294964704  ;;  %vm66_vm0 = vcmask 64512   ;;  %v63_v0 = vld [vmem:[#allocation7] sm:$0xff]  ;;  %v62_v1 = vld [vmem:[#allocation2] sm:$0x3] }
   0xf   :  { %v94_v2 = vld [vmem:[#allocation7 + $0x28] sm:$0xff]  ;;  %85 = vmatpush.msra.mxu0 %v63_v0  ;;  %v93_v3 = vld [vmem:[#allocation7 + $0x20] sm:$0xff]  ;;  %v92_v4 = vld [vmem:[#allocation7 + $0x18] sm:$0xff]  ;;  %vm97_vm1 = vcmask 261120   ;;  %s489_s0 = smov 4   ;;  %vm126_vm2 = vcmask 130048  }
  0x10   :  { %113 = vmatpush.msra.mxu1 %v94_v2  ;;  %308 = vmatmul.msk.f32.vlgmr.msra.gmra.mxu0 %vm66_vm0, %v62_v1  ;;  %v91_v5 = vld [vmem:[#allocation7 + $0x10] sm:$0xff]  ;;  %v324_v6 = vld [vmem:[#allocation7 + $0x8] ss:$0 sm:$0xff]  ;;  %v123_v10 = vld [vmem:[#allocation7 + $0x40] sm:$0xff]  ;;  %vm252_vm3 = vcmask 25600   ;;  %s490_s2 = smov 124  }
  0x11   :  { %144 = vmatpush.msra.mxu2 %v123_v10  ;;  %v122_v11 = vld [vmem:[#allocation7 + $0x38] sm:$0xff]  ;;  %v325_v13 = vld [vmem:[#allocation7 + $0x30] ss:$0 sm:$0xff]  ;;  %v326_v17 = vld [vmem:[#allocation7 + $0x48] ss:$0 sm:$0xff]  ;;  %vm164_vm4 = vcmask 31744  }
  0x12   :  { %114 = vmatpush.msra.mxu1 %v93_v3  ;;  %v153_v12 = vld [vmem:[#allocation5] sm:$0x3]  ;;  %v166_v25 = vld [vmem:[#allocation7 + $0x50] sm:$0xff]  ;;  %v194_v26 = vld [vmem:[#allocation7 + $0x68] sm:$0xff]  ;;  %s491_s9 = smov [#allocation9]   ;;  %s277_s13 = sshll.u32 %s554_s4, 4  ;;  %s278_s13 = int_to_ptr.hbm [resolvable:$true] %s277_s13 }
  0x13   :  { %145 = vmatpush.msra.mxu2 %v122_v11  ;;  %155 = vrot.lane.b32.xlu0 %v153_v12, %s489_s0  ;;  %v193_v31 = vld [vmem:[#allocation7 + $0x60] sm:$0xff]  ;;  %v224_v32 = vld [vmem:[#allocation7 + $0x90] sm:$0xff]  ;;  %v223_v33 = vld [vmem:[#allocation7 + $0x88] sm:$0xff]  ;;  %s275_s10 = sshll.u32 %s491_s9, 4  ;;  %s492_s14 = smov [#allocation11]   ;;  %vm250_vm5 = vcmask 58368   ;;  %s276_s10 = int_to_ptr.vmem [resolvable:$true] %s275_s10 }
  0x14   :  { %115 = vmatpush.msra.mxu1 %v92_v4  ;;  %187 = vmatpush.msra.mxu3 %v166_v25  ;;  %v327_v34 = vld [vmem:[#allocation7 + $0x58] ss:$0 sm:$0xff]  ;;  %v222_v38 = vld [vmem:[#allocation7 + $0x80] sm:$0xff]  ;;  %v328_v40 = vld [vmem:[#allocation7 + $0x70] ss:$0 sm:$0xff]  ;;  %s286_s15 = sshll.u32 %s492_s14, 4  ;;  %s287_s15 = int_to_ptr.vmem [resolvable:$true] %s286_s15 }
  0x15   :  { %214 = vmatpush.msrb.mxu0 %v194_v26  ;;  %v221_v39 = vld [vmem:[#allocation7 + $0x78] sm:$0xff]  ;;  %s288_s18 = sshll.u32 %s555_s5, 4  ;;  %s493_s19 = smov [#allocation8]   ;;  %s289_s18 = int_to_ptr.hbm [resolvable:$true] %s288_s18 }
  0x16   :  { %116 = vmatpush.msra.mxu1 %v91_v5  ;;  %242 = vmatpush.msrb.mxu3 %v224_v32  ;;  %v329_v44 = vld [vmem:[#allocation7 + $0x98] ss:$0 sm:$0xff]  ;;  %s264_s20 = sshll.u32 %s493_s19, 4  ;;  %s266_s23 = sshll.u32 %s553_s3, 4  ;;  %s265_s20 = int_to_ptr.vmem [resolvable:$true] %s264_s20  ;;  %s267_s23 = int_to_ptr.hbm [resolvable:$true] %s266_s23 }
  0x17   :  { %215 = vmatpush.msrb.mxu0 %v193_v31 }
  0x18   :  { %243 = vmatpush.msrb.mxu3 %v223_v33 }
  0x1a   :  { %244 = vmatpush.msrb.mxu3 %v222_v38 }
  0x1c   :  { %245 = vmatpush.msrb.mxu3 %v221_v39 }
  0x85   :  { %v156_v22 = vpop.permute.xlu0 %155 }
  0x8d   :  { %v87_v7 = vpop.f32.mrf.mxu0 }
  0x8e   :  { %v88_v8 = vadd.f32 %v324_v6, %v87_v7 }
  0x90   :  { %v90_v9 = vmax.f32 %v88_v8, 0.0 }
  0x92   :  { %309 = vmatmul.msk.f32.vlgmr.msra.gmra.mxu1 %vm97_vm1, %v90_v9 }
 0x10f   :  { %v118_v14 = vpop.f32.mrf.mxu1 }
 0x110   :  { %v119_v15 = vadd.f32 %v325_v13, %v118_v14 }
 0x112   :  { %v121_v16 = vmax.f32 %v119_v15, 0.0 }
 0x114   :  { %310 = vmatmul.msk.f32.vlgmr.msra.gmra.mxu2 %vm126_vm2, %v121_v16 }
 0x197   :  { %v147_v18 = vpop.f32.mrf.mxu2 }
 0x198   :  { %v148_v19 = vadd.f32 %v326_v17, %v147_v18 }
 0x19a   :  { %255 = vrot.lane.b32.xlu1 %v148_v19, %s490_s2  ;;  %v150_v20 = vmul.f32 0.5, %v148_v19  ;;  %253 = vst.msk [vmem:[#allocation9] sm:$0x3] %vm252_vm3, %v148_v19 }
 0x19b   :  { %280 = dma.vmem_to_hbm [thread:$0]  %s276_s10, 32, %s278_s13, [#allocation10]  }
 0x19c   :  { %v151_v21 = vmul.f32 1.442695, %v150_v20 }
 0x19e   :  { %330 = vpow2.f32 %v151_v21 }
 0x1a4   :  { %v331_v23 = vpop.eup %330 }
 0x1a5   :  { %v158_v24 = vmul.f32 %v331_v23, %v156_v22 }
 0x1a7   :  { %160 = vrot.lane.b32.xlu0 %v158_v24, %s490_s2 }
 0x20c   :  { %v256_v27 = vpop.permute.xlu1 %255 }
 0x20d   :  { %258 = vst.msk [vmem:[#allocation11] sm:$0x3] %vm252_vm3, %v256_v27 }
 0x20e   :  { %291 = dma.vmem_to_hbm [thread:$0]  %s287_s15, 32, %s289_s18, [#allocation10]  }
 0x219   :  { %v161_v28 = vpop.permute.xlu0 %160 }
 0x21a   :  { %v163_v29 = vadd.f32 %v161_v28, %v148_v19 }
 0x21c   :  { %v165_v30 = vsel %vm164_vm4, %v163_v29, 0.0 }
 0x21d   :  { %311 = vmatmul.msk.f32.vlgmr.msra.gmra.mxu3 %vm66_vm0, %v165_v30 }
 0x2a0   :  { %v189_v35 = vpop.f32.mrf.mxu3 }
 0x2a1   :  { %v190_v36 = vadd.f32 %v327_v34, %v189_v35 }
 0x2a3   :  { %v192_v37 = vmax.f32 %v190_v36, 0.0 }
 0x2a5   :  { %312 = vmatmul.msk.f32.vlgmr.msrb.gmra.mxu0 %vm126_vm2, %v192_v37 }
 0x322   :  { %v217_v41 = vpop.f32.mrf.mxu0 }
 0x323   :  { %v218_v42 = vadd.f32 %v328_v40, %v217_v41 }
 0x325   :  { %v220_v43 = vmax.f32 %v218_v42, 0.0 }
 0x327   :  { %313 = vmatmul.msk.f32.vlgmr.msrb.gmra.mxu3 %vm97_vm1, %v220_v43 }
 0x3aa   :  { %v247_v45 = vpop.f32.mrf.mxu3 }
 0x3ab   :  { %v248_v46 = vadd.f32 %v329_v44, %v247_v45 }
 0x3ad   :  { %251 = vst.msk [vmem:[#allocation8] sm:$0x3] %vm250_vm5, %v248_v46 }
 0x3ae   :  { %269 = dma.vmem_to_hbm [thread:$0]  %s265_s20, 32, %s267_s23, [#allocation4]  }
 0x3af   :  { %480 = dma.done.wait [#allocation4], 32  }
 0x3b0   :  { %481 = vsyncadd [#allocation4], 4294967264 }
 0x3b1   :  { %482 = dma.done.wait [#allocation10], 64  }
 0x3b2   :  { %483 = vsyncadd [#allocation10], 4294967232 }
 0x3b3   :  { %304 = vsyncpa [#allocation3], 1 }
 0x3b4   :  { %305 = vsyncpa [#allocation6], 1 }
 0x3b5   :  { %306 = vsyncpa [#allocation4], 1 }
 0x3b6   :  { %307 = vsyncpa [#allocation10], 1 }

</bundles_post_ra>
